<compile_context>
chip_gen: v7x
topology: tpu7x:2x2x1
jax: 0.10.0
libtpu: 0.0.40
codegen_flags: <defaults>
</compile_context>

<pallas_src>
import jax
import jax.numpy as jnp
from jax.experimental import pallas as pl
from jax.experimental.pallas import tpu as pltpu


def normalize_kernel(x_ref, mean_ref, inv_std_ref, o_ref):
    # x_ref:       (tr, tc) tile of flattened image planes (input dtype)
    # mean_ref:    (tr, 1)  per-row channel mean, f32
    # inv_std_ref: (tr, 1)  per-row 1/std, f32
    x = x_ref[...].astype(jnp.float32)
    o_ref[...] = ((x - mean_ref[...]) * inv_std_ref[...]).astype(o_ref.dtype)


def _sublane_multiple(dtype) -> int:
    itemsize = jnp.dtype(dtype).itemsize
    return {4: 8, 2: 16, 1: 32}.get(itemsize, 8)


def _pick_tiles(R, L, dtype, target_tile_bytes):
    itemsize = jnp.dtype(dtype).itemsize
    sub = _sublane_multiple(dtype)

    # Column tile: full width when it fits the budget; otherwise the largest
    # multiple of 128 within budget (keeps stores lane-dense / unmasked).
    max_tc = max(128, target_tile_bytes // (sub * itemsize))
    tc = L if L <= max_tc else (max_tc // 128) * 128

    # Row tile: as many sublane groups as fit the byte budget at this width.
    max_tr = max(sub, (target_tile_bytes // (tc * itemsize)) // sub * sub)
    tr = R if R <= max_tr else max_tr

    # Megacore: if the whole array collapsed into a single block but the
    # problem is non-trivial, split one "parallel" axis so both TCs get work.
    total_bytes = R * L * itemsize
    if total_bytes >= (1 << 20) and pl.cdiv(R, tr) * pl.cdiv(L, tc) < 2:
        if L >= 256:
            tc = max(128, ((pl.cdiv(L, 2) + 127) // 128) * 128)
        elif R >= 2 * sub:
            tr = max(sub, ((pl.cdiv(R, 2) + sub - 1) // sub) * sub)
    return tr, tc


def normalize(x, mean, std, *, target_tile_bytes=4 * 1024 * 1024):
    """(x - mean[c]) / std[c] for NCHW x, computed with a Pallas TPU kernel."""
    N, C, H, W = x.shape
    R, L = N * C, H * W

    # Per-channel affine params in f32 (precision kept even for low-precision
    # inputs); reciprocal amortized over C values instead of N*C*H*W elements.
    mean_f32 = mean.astype(jnp.float32)
    inv_std_f32 = 1.0 / std.astype(jnp.float32)
    mean2d = jnp.broadcast_to(mean_f32[None, :], (N, C)).reshape(R, 1)
    inv_std2d = jnp.broadcast_to(inv_std_f32[None, :], (N, C)).reshape(R, 1)

    x2d = x.reshape(R, L)  # row-major NCHW flatten: free, no data movement
    tr, tc = _pick_tiles(R, L, x.dtype, target_tile_bytes)
    # Column axis is the inner grid axis, so the (tr, 1) mean / 1/std blocks
    # (block index (i, 0)) are not re-fetched on every j step.
    grid = (pl.cdiv(R, tr), pl.cdiv(L, tc))

    out2d = pl.pallas_call(
        normalize_kernel,
        out_shape=jax.ShapeDtypeStruct((R, L), x.dtype),
        grid=grid,
        in_specs=[
            pl.BlockSpec((tr, tc), lambda i, j: (i, j)),   # x tile
            pl.BlockSpec((tr, 1), lambda i, j: (i, 0)),    # mean column (f32)
            pl.BlockSpec((tr, 1), lambda i, j: (i, 0)),    # 1/std column (f32)
        ],
        out_specs=pl.BlockSpec((tr, tc), lambda i, j: (i, j)),
        compiler_params=pltpu.CompilerParams(
            dimension_semantics=("parallel", "parallel"),
            # Double-buffered (in + out) ~4 MiB tiles + headroom; safe on
            # v5e/v6e (128 MiB physical) and v7x (64 MiB per TensorCore).
            vmem_limit_bytes=40 * 1024 * 1024,
        ),
    )(x2d, mean2d, inv_std2d)

    return out2d.reshape(N, C, H, W)


if __name__ == "__main__":
    key = jax.random.PRNGKey(0)

    # Deterministic "buffers" (what Normalizer.__init__ would register).
    C = 4
    mean = jnp.linspace(0.1, 0.4, C).astype(jnp.float32)   # shape (C,)
    std = jnp.linspace(0.5, 0.8, C).astype(jnp.float32)    # shape (C,)

    # Small NCHW input consistent with the module's forward.
    N, H, W = 2, 16, 16
    x = jax.random.normal(key, (N, C, H, W), dtype=jnp.float32)

    out = jax.block_until_ready(normalize(x, mean, std))

    # Pure-JAX reference matching torch semantics exactly (true division).
    ref = (x - mean[None, :, None, None]) / std[None, :, None, None]
    assert out.shape == x.shape
    assert out.dtype == x.dtype
    assert jnp.allclose(out, ref, rtol=1e-6, atol=1e-6)

    # Non-128-multiple spatial size (e.g. 7x7 feature maps) exercises the
    # cdiv / full-dim-block path.
    x2 = jax.random.normal(jax.random.PRNGKey(1), (N, C, 7, 7), dtype=jnp.float32)
    out2 = jax.block_until_ready(normalize(x2, mean, std))
    ref2 = (x2 - mean[None, :, None, None]) / std[None, :, None, None]
    assert jnp.allclose(out2, ref2, rtol=1e-6, atol=1e-6)

    # bf16 input exercises the packed-dtype (16-sublane) tiling + f32 compute.
    x3 = jax.random.normal(jax.random.PRNGKey(2), (N, C, H, W), dtype=jnp.bfloat16)
    out3 = jax.block_until_ready(normalize(x3, mean, std))
    ref3 = ((x3.astype(jnp.float32) - mean[None, :, None, None])
            / std[None, :, None, None]).astype(jnp.bfloat16)
    assert out3.dtype == jnp.bfloat16
    assert jnp.allclose(out3.astype(jnp.float32), ref3.astype(jnp.float32),
                        rtol=2e-2, atol=2e-2)

    print("KERNEL_OK")
</pallas_src>

<mosaic_0001>
module attributes {stable_mosaic.version = 11 : i64} {
  func.func @normalize_kernel(%arg0: i32, %arg1: i32, %arg2: memref<8x256xf32, #tpu.memory_space<vmem>>, %arg3: memref<8x1xf32, #tpu.memory_space<vmem>>, %arg4: memref<8x1xf32, #tpu.memory_space<vmem>>, %arg5: memref<8x256xf32, #tpu.memory_space<vmem>>) attributes {dimension_semantics = [#tpu.dimension_semantics<parallel>, #tpu.dimension_semantics<parallel>], iteration_bounds = array<i64: 1, 1>, scalar_prefetch = 0 : i64, scratch_operands = 0 : i64, tpu.core_type = #tpu.core_type<tc>, window_params = [{transform_indices = @transform_0, window_bounds = array<i64: 8, 256>}, {transform_indices = @transform_1, window_bounds = array<i64: 8, 1>}, {transform_indices = @transform_2, window_bounds = array<i64: 8, 1>}, {transform_indices = @transform_3, window_bounds = array<i64: 8, 256>}]} {
    %c0 = arith.constant 0 : index
    %c0_0 = arith.constant 0 : index
    %0 = vector.load %arg2[%c0, %c0_0] : memref<8x256xf32, #tpu.memory_space<vmem>>, vector<8x256xf32>
    %c0_1 = arith.constant 0 : index
    %c0_2 = arith.constant 0 : index
    %1 = vector.load %arg3[%c0_1, %c0_2] : memref<8x1xf32, #tpu.memory_space<vmem>>, vector<8x1xf32>
    %2 = vector.broadcast %1 : vector<8x1xf32> to vector<8x256xf32>
    %3 = arith.subf %0, %2 : vector<8x256xf32>
    %c0_3 = arith.constant 0 : index
    %c0_4 = arith.constant 0 : index
    %4 = vector.load %arg4[%c0_3, %c0_4] : memref<8x1xf32, #tpu.memory_space<vmem>>, vector<8x1xf32>
    %5 = vector.broadcast %4 : vector<8x1xf32> to vector<8x256xf32>
    %6 = arith.mulf %3, %5 : vector<8x256xf32>
    %c0_5 = arith.constant 0 : index
    %c0_6 = arith.constant 0 : index
    %7 = vector.load %arg5[%c0_5, %c0_6] : memref<8x256xf32, #tpu.memory_space<vmem>>, vector<8x256xf32>
    tpu.vector_store %arg5[%c0_5, %c0_6], %6 {strides = array<i32>} : memref<8x256xf32, #tpu.memory_space<vmem>>, vector<8x256xf32>,
    return
  }
  func.func @transform_0(%arg0: i32, %arg1: i32) -> (i32, i32) {
    %c0_i32 = arith.constant 0 : i32
    return %arg0, %arg1 : i32, i32
  }
  func.func @transform_1(%arg0: i32, %arg1: i32) -> (i32, i32) {
    %c0_i32 = arith.constant 0 : i32
    %c0_i32_0 = arith.constant 0 : i32
    return %arg0, %c0_i32 : i32, i32
  }
  func.func @transform_2(%arg0: i32, %arg1: i32) -> (i32, i32) {
    %c0_i32 = arith.constant 0 : i32
    %c0_i32_0 = arith.constant 0 : i32
    return %arg0, %c0_i32 : i32, i32
  }
  func.func @transform_3(%arg0: i32, %arg1: i32) -> (i32, i32) {
    %c0_i32 = arith.constant 0 : i32
    return %arg0, %arg1 : i32, i32
  }
}

</mosaic_0001>

<bundles_post_ra>
// kernel: tpu_custom_call.1
= control target key start
LH: loop header
LB: loop body
LE: loop exit
PB: predicated region body
PF: predicated region fallthrough
CT: control target
= control target key end

     0   :  { %s122_s0 = inlined_call_operand.vmem [shape: f32[8,256], index: 0, kind: input, shape index: {}]   ;;  %s123_s1 = inlined_call_operand.vmem [shape: f32[8,1], index: 1, kind: input, shape index: {}]   ;;  %s124_s2 = inlined_call_operand.vmem [shape: f32[8,1], index: 2, kind: input, shape index: {}]   ;;  %s125_s3 = inlined_call_operand.hbm [shape: f32[8,256], index: 3, kind: output, shape index: {}]  }
   0x1   :  { %v17_v0 = vld [vmem:[%s123_s1] sm:$0xff] }
   0x2   :  { %8 = vsyncpa [#allocation3], 0  ;;  %v76_v1 = vmov 0   ;;  %v25_v2 = vld [vmem:[%s124_s2] sm:$0xff]  ;;  %v16_v5 = vld [vmem:[%s122_s0 + $0x8] sm:$0xff]  ;;  %s77_s20 = smov [#allocation2]  }
   0x3   :  { %51 = vset.pattern.permute.xlu0 %v76_v1  ;;  %v15_v4 = vld [vmem:[%s122_s0] sm:$0xff]  ;;  %s41_s1 = sshll.u32 %s77_s20, 4  ;;  %s42_s1 = int_to_ptr.vmem [resolvable:$true] %s41_s1 }
   0x4   :  { %20 = vperm.xlu0 %51, %v17_v0   ;;  %s52_s2 = scalar_lea.vmem %s42_s1, 256  ;;  %p57_p1 = scmp.lt.s32.totalorder %s42_s1, %s42_s1 }
   0x5   :  { %p53_p0 = scmp.ne.s32.totalorder %s42_s1, %s52_s2  ;;  %p58_p2 = scmp.lt.s32.totalorder %s52_s2, %s52_s2 }
   0x7   :  { %p59_p3 = por %p58_p2, %p57_p1 }
   0x8   :  { %28 = vperm.xlu0 %51, %v25_v2  }
   0x9   :  { %p60_p4 = pnand %p59_p3, %p53_p0 }
  0x83   :  { %v21_v3 = vpop.permute.xlu0 %20 }
  0x84   :  { %v23_v6 = vsub.f32 %v15_v4, %v21_v3  ;;  %v24_v7 = vsub.f32 %v16_v5, %v21_v3 }
  0x87   :  { %v29_v8 = vpop.permute.xlu0 %28 }
  0x88   :  { %v31_v9 = vmul.f32 %v29_v8, %v23_v6  ;;  %v32_v10 = vmul.f32 %v29_v8, %v24_v7 }
  0x8a   :  { %33 = vst [vmem:[#allocation2] sm:$0xff] %v31_v9  ;;  %34 = vst [vmem:[#allocation2 + $0x8] sm:$0xff] %v32_v10 }
  0x8b   :  { %63 = shalt.err (!%p60_p4)
}
  0x8c   :  { %s64_s0 = scalar_lea.hbm %s125_s3, 256 }
  0x8d   :  { %p65_p5 = scmp.ne.s32.totalorder %s125_s3, %s64_s0  ;;  %p68_p6 = scmp.lt.u32.totalorder %s64_s0, %s125_s3 }
  0x8f   :  { %p70_p7 = pnand %p68_p6, %p65_p5 }
  0x91   :  { %73 = shalt.err (!%p70_p7)
}
  0x92   :  { %44 = dma.vmem_to_hbm [thread:$0]  %s42_s1, 256, %s125_s3, [#allocation3]  }
  0x93   :  { %74 = dma.done.wait [#allocation3], 256  }
  0x94   :  { %75 = vsyncadd [#allocation3], 4294967040 }
  0x95   :  { %48 = vsyncpa [#allocation3], 1 }

</bundles_post_ra>
